<compile_context>
chip_gen: v7x
topology: tpu7x:2x2x1
jax: 0.10.0
libtpu: 0.0.40
codegen_flags: <defaults>
</compile_context>

<pallas_src>
import jax
import jax.numpy as jnp
from jax.experimental import pallas as pl
from jax.experimental.pallas import tpu as pltpu


def _round_up(n, m):
    return ((n + m - 1) // m) * m


def _mlp_kernel(x_ref, w1_ref, b1_ref, w2_ref, b2_ref, w3_ref, b3_ref, o_ref, h_ref):
    # Layer 1: x @ W1 + b1, LeakyReLU(0.1). bf16 MXU operands, f32 accumulation.
    h = jnp.dot(x_ref[...], w1_ref[...], preferred_element_type=jnp.float32)
    h = h + b1_ref[...]
    h = jnp.maximum(h, 0.1 * h)          # LeakyReLU(0.1) in f32 on the VPU
    h_ref[...] = h.astype(h_ref.dtype)   # park activation in VMEM scratch (bf16)

    # Layer 2: h @ W2 + b2, LeakyReLU(0.1).
    h = jnp.dot(h_ref[...], w2_ref[...], preferred_element_type=jnp.float32)
    h = h + b2_ref[...]
    h = jnp.maximum(h, 0.1 * h)
    h_ref[...] = h.astype(h_ref.dtype)

    # Layer 3: h @ W3 + b3 (no activation).
    out = jnp.dot(h_ref[...], w3_ref[...], preferred_element_type=jnp.float32)
    out = out + b3_ref[...]
    o_ref[...] = out.astype(o_ref.dtype)


def deep_mlp_g(x, params, *, block_b=256, compute_dtype=jnp.bfloat16):
    """Forward pass of DeepMLP_G as a single fused Pallas kernel.

    x: (B, input_size) float32
    params: dict with w1 (in,hid), b1 (1,hid), w2 (hid,hid), b2 (1,hid),
            w3 (hid,out), b3 (1,out)  -- weights stored (in_features, out_features).
    """
    w1, b1 = params["w1"], params["b1"]
    w2, b2 = params["w2"], params["b2"]
    w3, b3 = params["w3"], params["b3"]

    B, in_dim = x.shape
    hid = w1.shape[1]
    out_dim = w3.shape[1]
    out_dtype = x.dtype

    # Lane-dense padding: feature dims -> multiples of 128.
    in_p = _round_up(in_dim, 128)
    hid_p = _round_up(hid, 128)
    out_p = _round_up(out_dim, 128)

    def pad2(a, rows, cols):
        return jnp.pad(a, ((0, rows - a.shape[0]), (0, cols - a.shape[1])))

    x_p = pad2(x, B, in_p).astype(compute_dtype)
    w1_p = pad2(w1, in_p, hid_p).astype(compute_dtype)
    w2_p = pad2(w2, hid_p, hid_p).astype(compute_dtype)
    w3_p = pad2(w3, hid_p, out_p).astype(compute_dtype)
    b1_p = pad2(b1, 1, hid_p).astype(jnp.float32)
    b2_p = pad2(b2, 1, hid_p).astype(jnp.float32)
    b3_p = pad2(b3, 1, out_p).astype(jnp.float32)

    tb = max(1, min(block_b, B))          # batch tile (>= 2 tiles lets v7x use both TCs)
    grid = (pl.cdiv(B, tb),)

    # Explicit VMEM budget: resident (single-buffered) weights + f32 biases
    # + double-buffered x/out tiles + activation scratch, with headroom.
    c_bytes = jnp.dtype(compute_dtype).itemsize
    o_bytes = jnp.dtype(out_dtype).itemsize
    vmem_need = (
        (in_p * hid_p + hid_p * hid_p + hid_p * out_p) * c_bytes
        + (2 * hid_p + out_p) * 4
        + 2 * tb * in_p * c_bytes
        + 2 * tb * out_p * o_bytes
        + tb * hid_p * c_bytes
    )
    vmem_limit = min(max(int(1.25 * vmem_need) + (4 << 20), 32 << 20), 64 << 20)

    def make_call(single_buffer_weights):
        res = {"pipeline_mode": pl.Buffered(1)} if single_buffer_weights else {}
        in_specs = [
            pl.BlockSpec((tb, in_p), lambda i: (i, 0)),              # x: tiled over batch
            pl.BlockSpec((in_p, hid_p), lambda i: (0, 0), **res),    # w1: resident
            pl.BlockSpec((1, hid_p), lambda i: (0, 0), **res),       # b1
            pl.BlockSpec((hid_p, hid_p), lambda i: (0, 0), **res),   # w2
            pl.BlockSpec((1, hid_p), lambda i: (0, 0), **res),       # b2
            pl.BlockSpec((hid_p, out_p), lambda i: (0, 0), **res),   # w3
            pl.BlockSpec((1, out_p), lambda i: (0, 0), **res),       # b3
        ]
        return pl.pallas_call(
            _mlp_kernel,
            out_shape=jax.ShapeDtypeStruct((B, out_p), out_dtype),
            grid_spec=pltpu.PrefetchScalarGridSpec(
                num_scalar_prefetch=0,
                grid=grid,
                in_specs=in_specs,
                out_specs=pl.BlockSpec((tb, out_p), lambda i: (i, 0)),  # lane-dense output
                scratch_shapes=[pltpu.VMEM((tb, hid_p), compute_dtype)],
            ),
            compiler_params=pltpu.CompilerParams(
                dimension_semantics=("parallel",),
                vmem_limit_bytes=vmem_limit,
            ),
        )

    args = (x_p, w1_p, b1_p, w2_p, b2_p, w3_p, b3_p)
    try:
        out_padded = jax.block_until_ready(make_call(True)(*args))
    except Exception:
        # Fallback if this JAX build does not accept Buffered(1) single-buffering.
        out_padded = make_call(False)(*args)

    return out_padded[:, :out_dim]


def init_params(key, input_size, hidden_size, output_size, dtype=jnp.float32):
    """Deterministic init mirroring nn.Linear's U(-1/sqrt(fan_in), 1/sqrt(fan_in))."""
    ks = jax.random.split(key, 6)

    def linear(kw, kb, fan_in, fan_out):
        bound = 1.0 / jnp.sqrt(fan_in)
        w = jax.random.uniform(kw, (fan_in, fan_out), dtype, -bound, bound)
        b = jax.random.uniform(kb, (1, fan_out), dtype, -bound, bound)
        return w, b

    w1, b1 = linear(ks[0], ks[1], input_size, hidden_size)
    w2, b2 = linear(ks[2], ks[3], hidden_size, hidden_size)
    w3, b3 = linear(ks[4], ks[5], hidden_size, output_size)
    return {"w1": w1, "b1": b1, "w2": w2, "b2": b2, "w3": w3, "b3": b3}


def _reference(x, p, compute_dtype=jnp.bfloat16):
    """Pure-JAX reference matching the kernel's bf16-operand / f32-accumulate math."""
    def dot(a, b):
        return jnp.dot(a.astype(compute_dtype), b.astype(compute_dtype),
                       preferred_element_type=jnp.float32)

    def lrelu(v):
        return jnp.maximum(v, 0.1 * v)

    h = lrelu(dot(x, p["w1"]) + p["b1"])
    h = lrelu(dot(h, p["w2"]) + p["b2"])
    return dot(h, p["w3"]) + p["b3"]


if __name__ == "__main__":
    # Small shapes consistent with the module: batch=8, input=16, hidden=32, output=16.
    input_size, hidden_size, output_size = 16, 32, 16
    batch = 8

    key = jax.random.PRNGKey(0)
    k_x, k_p = jax.random.split(key)
    x = jax.random.normal(k_x, (batch, input_size), dtype=jnp.float32)
    params = init_params(k_p, input_size, hidden_size, output_size)

    out = deep_mlp_g(x, params)
    out = jax.block_until_ready(out)

    ref = _reference(x, params)
    assert out.shape == (batch, output_size)
    max_err = float(jnp.max(jnp.abs(out - ref)))
    assert jnp.allclose(out, ref, atol=1e-3, rtol=1e-3), (
        f"Pallas output mismatch vs reference (max abs err {max_err})"
    )

    print("KERNEL_OK")
</pallas_src>

<mosaic_0001>
module attributes {stable_mosaic.version = 11 : i64} {
  func.func @_mlp_kernel(%arg0: i32, %arg1: memref<8x128xbf16, #tpu.memory_space<vmem>>, %arg2: memref<128x128xbf16, #tpu.memory_space<vmem>>, %arg3: memref<1x128xf32, #tpu.memory_space<vmem>>, %arg4: memref<128x128xbf16, #tpu.memory_space<vmem>>, %arg5: memref<1x128xf32, #tpu.memory_space<vmem>>, %arg6: memref<128x128xbf16, #tpu.memory_space<vmem>>, %arg7: memref<1x128xf32, #tpu.memory_space<vmem>>, %arg8: memref<8x128xf32, #tpu.memory_space<vmem>>, %arg9: memref<8x128xbf16, #tpu.memory_space<vmem>>) attributes {dimension_semantics = [#tpu.dimension_semantics<parallel>], iteration_bounds = array<i64: 1>, scalar_prefetch = 0 : i64, scratch_operands = 1 : i64, tpu.core_type = #tpu.core_type<tc>, window_params = [{transform_indices = @transform_0, window_bounds = array<i64: 8, 128>}, {pipeline_mode = #tpu.pipeline_mode<synchronous>, transform_indices = @transform_1, window_bounds = array<i64: 128, 128>}, {pipeline_mode = #tpu.pipeline_mode<synchronous>, transform_indices = @transform_2, window_bounds = array<i64: 1, 128>}, {pipeline_mode = #tpu.pipeline_mode<synchronous>, transform_indices = @transform_3, window_bounds = array<i64: 128, 128>}, {pipeline_mode = #tpu.pipeline_mode<synchronous>, transform_indices = @transform_4, window_bounds = array<i64: 1, 128>}, {pipeline_mode = #tpu.pipeline_mode<synchronous>, transform_indices = @transform_5, window_bounds = array<i64: 128, 128>}, {pipeline_mode = #tpu.pipeline_mode<synchronous>, transform_indices = @transform_6, window_bounds = array<i64: 1, 128>}, {transform_indices = @transform_7, window_bounds = array<i64: 8, 128>}]} {
    %c0 = arith.constant 0 : index
    %c0_0 = arith.constant 0 : index
    %0 = vector.load %arg1[%c0, %c0_0] : memref<8x128xbf16, #tpu.memory_space<vmem>>, vector<8x128xbf16>
    %c0_1 = arith.constant 0 : index
    %c0_2 = arith.constant 0 : index
    %1 = vector.load %arg2[%c0_1, %c0_2] : memref<128x128xbf16, #tpu.memory_space<vmem>>, vector<128x128xbf16>
    %cst = arith.constant dense<0.000000e+00> : vector<8x128xf32>
    %2 = tpu.matmul %0, %1, %cst {dimension_numbers = #tpu.dot_dimension_numbers<[1], [0], [0], [1], [0, 0, 1, 1], [], []>} : vector<8x128xbf16>, vector<128x128xbf16>, vector<8x128xf32> -> vector<8x128xf32>
    %c0_3 = arith.constant 0 : index
    %c0_4 = arith.constant 0 : index
    %3 = vector.load %arg3[%c0_3, %c0_4] : memref<1x128xf32, #tpu.memory_space<vmem>>, vector<1x128xf32>
    %4 = vector.broadcast %3 : vector<1x128xf32> to vector<8x128xf32>
    %5 = arith.addf %2, %4 : vector<8x128xf32>
    %cst_5 = arith.constant 1.000000e-01 : f32
    %6 = vector.broadcast %cst_5 : f32 to vector<8x128xf32>
    %7 = arith.mulf %6, %5 : vector<8x128xf32>
    %8 = arith.maximumf %5, %7 : vector<8x128xf32>
    %9 = arith.truncf %8 : vector<8x128xf32> to vector<8x128xbf16>
    %c0_6 = arith.constant 0 : index
    %c0_7 = arith.constant 0 : index
    %10 = vector.load %arg9[%c0_6, %c0_7] : memref<8x128xbf16, #tpu.memory_space<vmem>>, vector<8x128xbf16>
    tpu.vector_store %arg9[%c0_6, %c0_7], %9 {strides = array<i32>} : memref<8x128xbf16, #tpu.memory_space<vmem>>, vector<8x128xbf16>,
    %c0_8 = arith.constant 0 : index
    %c0_9 = arith.constant 0 : index
    %11 = vector.load %arg9[%c0_8, %c0_9] : memref<8x128xbf16, #tpu.memory_space<vmem>>, vector<8x128xbf16>
    %c0_10 = arith.constant 0 : index
    %c0_11 = arith.constant 0 : index
    %12 = vector.load %arg4[%c0_10, %c0_11] : memref<128x128xbf16, #tpu.memory_space<vmem>>, vector<128x128xbf16>
    %cst_12 = arith.constant dense<0.000000e+00> : vector<8x128xf32>
    %13 = tpu.matmul %11, %12, %cst_12 {dimension_numbers = #tpu.dot_dimension_numbers<[1], [0], [0], [1], [0, 0, 1, 1], [], []>} : vector<8x128xbf16>, vector<128x128xbf16>, vector<8x128xf32> -> vector<8x128xf32>
    %c0_13 = arith.constant 0 : index
    %c0_14 = arith.constant 0 : index
    %14 = vector.load %arg5[%c0_13, %c0_14] : memref<1x128xf32, #tpu.memory_space<vmem>>, vector<1x128xf32>
    %15 = vector.broadcast %14 : vector<1x128xf32> to vector<8x128xf32>
    %16 = arith.addf %13, %15 : vector<8x128xf32>
    %cst_15 = arith.constant 1.000000e-01 : f32
    %17 = vector.broadcast %cst_15 : f32 to vector<8x128xf32>
    %18 = arith.mulf %17, %16 : vector<8x128xf32>
    %19 = arith.maximumf %16, %18 : vector<8x128xf32>
    %20 = arith.truncf %19 : vector<8x128xf32> to vector<8x128xbf16>
    %c0_16 = arith.constant 0 : index
    %c0_17 = arith.constant 0 : index
    %21 = vector.load %arg9[%c0_16, %c0_17] : memref<8x128xbf16, #tpu.memory_space<vmem>>, vector<8x128xbf16>
    tpu.vector_store %arg9[%c0_16, %c0_17], %20 {strides = array<i32>} : memref<8x128xbf16, #tpu.memory_space<vmem>>, vector<8x128xbf16>,
    %c0_18 = arith.constant 0 : index
    %c0_19 = arith.constant 0 : index
    %22 = vector.load %arg9[%c0_18, %c0_19] : memref<8x128xbf16, #tpu.memory_space<vmem>>, vector<8x128xbf16>
    %c0_20 = arith.constant 0 : index
    %c0_21 = arith.constant 0 : index
    %23 = vector.load %arg6[%c0_20, %c0_21] : memref<128x128xbf16, #tpu.memory_space<vmem>>, vector<128x128xbf16>
    %cst_22 = arith.constant dense<0.000000e+00> : vector<8x128xf32>
    %24 = tpu.matmul %22, %23, %cst_22 {dimension_numbers = #tpu.dot_dimension_numbers<[1], [0], [0], [1], [0, 0, 1, 1], [], []>} : vector<8x128xbf16>, vector<128x128xbf16>, vector<8x128xf32> -> vector<8x128xf32>
    %c0_23 = arith.constant 0 : index
    %c0_24 = arith.constant 0 : index
    %25 = vector.load %arg7[%c0_23, %c0_24] : memref<1x128xf32, #tpu.memory_space<vmem>>, vector<1x128xf32>
    %26 = vector.broadcast %25 : vector<1x128xf32> to vector<8x128xf32>
    %27 = arith.addf %24, %26 : vector<8x128xf32>
    %c0_25 = arith.constant 0 : index
    %c0_26 = arith.constant 0 : index
    %28 = vector.load %arg8[%c0_25, %c0_26] : memref<8x128xf32, #tpu.memory_space<vmem>>, vector<8x128xf32>
    tpu.vector_store %arg8[%c0_25, %c0_26], %27 {strides = array<i32>} : memref<8x128xf32, #tpu.memory_space<vmem>>, vector<8x128xf32>,
    return
  }
  func.func @transform_0(%arg0: i32) -> (i32, i32) {
    %c0_i32 = arith.constant 0 : i32
    %c0_i32_0 = arith.constant 0 : i32
    return %arg0, %c0_i32 : i32, i32
  }
  func.func @transform_1(%arg0: i32) -> (i32, i32) {
    %c0_i32 = arith.constant 0 : i32
    %c0_i32_0 = arith.constant 0 : i32
    %c0_i32_1 = arith.constant 0 : i32
    return %c0_i32, %c0_i32_0 : i32, i32
  }
  func.func @transform_2(%arg0: i32) -> (i32, i32) {
    %c0_i32 = arith.constant 0 : i32
    %c0_i32_0 = arith.constant 0 : i32
    %c0_i32_1 = arith.constant 0 : i32
    return %c0_i32, %c0_i32_0 : i32, i32
  }
  func.func @transform_3(%arg0: i32) -> (i32, i32) {
    %c0_i32 = arith.constant 0 : i32
    %c0_i32_0 = arith.constant 0 : i32
    %c0_i32_1 = arith.constant 0 : i32
    return %c0_i32, %c0_i32_0 : i32, i32
  }
  func.func @transform_4(%arg0: i32) -> (i32, i32) {
    %c0_i32 = arith.constant 0 : i32
    %c0_i32_0 = arith.constant 0 : i32
    %c0_i32_1 = arith.constant 0 : i32
    return %c0_i32, %c0_i32_0 : i32, i32
  }
  func.func @transform_5(%arg0: i32) -> (i32, i32) {
    %c0_i32 = arith.constant 0 : i32
    %c0_i32_0 = arith.constant 0 : i32
    %c0_i32_1 = arith.constant 0 : i32
    return %c0_i32, %c0_i32_0 : i32, i32
  }
  func.func @transform_6(%arg0: i32) -> (i32, i32) {
    %c0_i32 = arith.constant 0 : i32
    %c0_i32_0 = arith.constant 0 : i32
    %c0_i32_1 = arith.constant 0 : i32
    return %c0_i32, %c0_i32_0 : i32, i32
  }
  func.func @transform_7(%arg0: i32) -> (i32, i32) {
    %c0_i32 = arith.constant 0 : i32
    %c0_i32_0 = arith.constant 0 : i32
    return %arg0, %c0_i32 : i32, i32
  }
}

module attributes {stable_mosaic.version = 11 : i64} {
  func.func @_mlp_kernel(%arg0: i32, %arg1: memref<8x128xbf16, #tpu.memory_space<vmem>>, %arg2: memref<128x128xbf16, #tpu.memory_space<vmem>>, %arg3: memref<1x128xf32, #tpu.memory_space<vmem>>, %arg4: memref<128x128xbf16, #tpu.memory_space<vmem>>, %arg5: memref<1x128xf32, #tpu.memory_space<vmem>>, %arg6: memref<128x128xbf16, #tpu.memory_space<vmem>>, %arg7: memref<1x128xf32, #tpu.memory_space<vmem>>, %arg8: memref<8x128xf32, #tpu.memory_space<vmem>>, %arg9: memref<8x128xbf16, #tpu.memory_space<vmem>>) attributes {dimension_semantics = [#tpu.dimension_semantics<parallel>], iteration_bounds = array<i64: 1>, scalar_prefetch = 0 : i64, scratch_operands = 1 : i64, tpu.core_type = #tpu.core_type<tc>, window_params = [{transform_indices = @transform_0, window_bounds = array<i64: 8, 128>}, {pipeline_mode = #tpu.pipeline_mode<synchronous>, transform_indices = @transform_1, window_bounds = array<i64: 128, 128>}, {pipeline_mode = #tpu.pipeline_mode<synchronous>, transform_indices = @transform_2, window_bounds = array<i64: 1, 128>}, {pipeline_mode = #tpu.pipeline_mode<synchronous>, transform_indices = @transform_3, window_bounds = array<i64: 128, 128>}, {pipeline_mode = #tpu.pipeline_mode<synchronous>, transform_indices = @transform_4, window_bounds = array<i64: 1, 128>}, {pipeline_mode = #tpu.pipeline_mode<synchronous>, transform_indices = @transform_5, window_bounds = array<i64: 128, 128>}, {pipeline_mode = #tpu.pipeline_mode<synchronous>, transform_indices = @transform_6, window_bounds = array<i64: 1, 128>}, {transform_indices = @transform_7, window_bounds = array<i64: 8, 128>}]} {
    %c0 = arith.constant 0 : index
    %c0_0 = arith.constant 0 : index
    %0 = vector.load %arg1[%c0, %c0_0] : memref<8x128xbf16, #tpu.memory_space<vmem>>, vector<8x128xbf16>
    %c0_1 = arith.constant 0 : index
    %c0_2 = arith.constant 0 : index
    %1 = vector.load %arg2[%c0_1, %c0_2] : memref<128x128xbf16, #tpu.memory_space<vmem>>, vector<128x128xbf16>
    %cst = arith.constant dense<0.000000e+00> : vector<8x128xf32>
    %2 = tpu.matmul %0, %1, %cst {dimension_numbers = #tpu.dot_dimension_numbers<[1], [0], [0], [1], [0, 0, 1, 1], [], []>} : vector<8x128xbf16>, vector<128x128xbf16>, vector<8x128xf32> -> vector<8x128xf32>
    %c0_3 = arith.constant 0 : index
    %c0_4 = arith.constant 0 : index
    %3 = vector.load %arg3[%c0_3, %c0_4] : memref<1x128xf32, #tpu.memory_space<vmem>>, vector<1x128xf32>
    %4 = vector.broadcast %3 : vector<1x128xf32> to vector<8x128xf32>
    %5 = arith.addf %2, %4 : vector<8x128xf32>
    %cst_5 = arith.constant 1.000000e-01 : f32
    %6 = vector.broadcast %cst_5 : f32 to vector<8x128xf32>
    %7 = arith.mulf %6, %5 : vector<8x128xf32>
    %8 = arith.maximumf %5, %7 : vector<8x128xf32>
    %9 = arith.truncf %8 : vector<8x128xf32> to vector<8x128xbf16>
    %c0_6 = arith.constant 0 : index
    %c0_7 = arith.constant 0 : index
    %10 = vector.load %arg9[%c0_6, %c0_7] : memref<8x128xbf16, #tpu.memory_space<vmem>>, vector<8x128xbf16>
    tpu.vector_store %arg9[%c0_6, %c0_7], %9 {strides = array<i32>} : memref<8x128xbf16, #tpu.memory_space<vmem>>, vector<8x128xbf16>,
    %c0_8 = arith.constant 0 : index
    %c0_9 = arith.constant 0 : index
    %11 = vector.load %arg9[%c0_8, %c0_9] : memref<8x128xbf16, #tpu.memory_space<vmem>>, vector<8x128xbf16>
    %c0_10 = arith.constant 0 : index
    %c0_11 = arith.constant 0 : index
    %12 = vector.load %arg4[%c0_10, %c0_11] : memref<128x128xbf16, #tpu.memory_space<vmem>>, vector<128x128xbf16>
    %cst_12 = arith.constant dense<0.000000e+00> : vector<8x128xf32>
    %13 = tpu.matmul %11, %12, %cst_12 {dimension_numbers = #tpu.dot_dimension_numbers<[1], [0], [0], [1], [0, 0, 1, 1], [], []>} : vector<8x128xbf16>, vector<128x128xbf16>, vector<8x128xf32> -> vector<8x128xf32>
    %c0_13 = arith.constant 0 : index
    %c0_14 = arith.constant 0 : index
    %14 = vector.load %arg5[%c0_13, %c0_14] : memref<1x128xf32, #tpu.memory_space<vmem>>, vector<1x128xf32>
    %15 = vector.broadcast %14 : vector<1x128xf32> to vector<8x128xf32>
    %16 = arith.addf %13, %15 : vector<8x128xf32>
    %cst_15 = arith.constant 1.000000e-01 : f32
    %17 = vector.broadcast %cst_15 : f32 to vector<8x128xf32>
    %18 = arith.mulf %17, %16 : vector<8x128xf32>
    %19 = arith.maximumf %16, %18 : vector<8x128xf32>
    %20 = arith.truncf %19 : vector<8x128xf32> to vector<8x128xbf16>
    %c0_16 = arith.constant 0 : index
    %c0_17 = arith.constant 0 : index
    %21 = vector.load %arg9[%c0_16, %c0_17] : memref<8x128xbf16, #tpu.memory_space<vmem>>, vector<8x128xbf16>
    tpu.vector_store %arg9[%c0_16, %c0_17], %20 {strides = array<i32>} : memref<8x128xbf16, #tpu.memory_space<vmem>>, vector<8x128xbf16>,
    %c0_18 = arith.constant 0 : index
    %c0_19 = arith.constant 0 : index
    %22 = vector.load %arg9[%c0_18, %c0_19] : memref<8x128xbf16, #tpu.memory_space<vmem>>, vector<8x128xbf16>
    %c0_20 = arith.constant 0 : index
    %c0_21 = arith.constant 0 : index
    %23 = vector.load %arg6[%c0_20, %c0_21] : memref<128x128xbf16, #tpu.memory_space<vmem>>, vector<128x128xbf16>
    %cst_22 = arith.constant dense<0.000000e+00> : vector<8x128xf32>
    %24 = tpu.matmul %22, %23, %cst_22 {dimension_numbers = #tpu.dot_dimension_numbers<[1], [0], [0], [1], [0, 0, 1, 1], [], []>} : vector<8x128xbf16>, vector<128x128xbf16>, vector<8x128xf32> -> vector<8x128xf32>
    %c0_23 = arith.constant 0 : index
    %c0_24 = arith.constant 0 : index
    %25 = vector.load %arg7[%c0_23, %c0_24] : memref<1x128xf32, #tpu.memory_space<vmem>>, vector<1x128xf32>
    %26 = vector.broadcast %25 : vector<1x128xf32> to vector<8x128xf32>
    %27 = arith.addf %24, %26 : vector<8x128xf32>
    %c0_25 = arith.constant 0 : index
    %c0_26 = arith.constant 0 : index
    %28 = vector.load %arg8[%c0_25, %c0_26] : memref<8x128xf32, #tpu.memory_space<vmem>>, vector<8x128xf32>
    tpu.vector_store %arg8[%c0_25, %c0_26], %27 {strides = array<i32>} : memref<8x128xf32, #tpu.memory_space<vmem>>, vector<8x128xf32>,
    return
  }
  func.func @transform_0(%arg0: i32) -> (i32, i32) {
    %c0_i32 = arith.constant 0 : i32
    %c0_i32_0 = arith.constant 0 : i32
    return %arg0, %c0_i32 : i32, i32
  }
  func.func @transform_1(%arg0: i32) -> (i32, i32) {
    %c0_i32 = arith.constant 0 : i32
    %c0_i32_0 = arith.constant 0 : i32
    %c0_i32_1 = arith.constant 0 : i32
    return %c0_i32, %c0_i32_0 : i32, i32
  }
  func.func @transform_2(%arg0: i32) -> (i32, i32) {
    %c0_i32 = arith.constant 0 : i32
    %c0_i32_0 = arith.constant 0 : i32
    %c0_i32_1 = arith.constant 0 : i32
    return %c0_i32, %c0_i32_0 : i32, i32
  }
  func.func @transform_3(%arg0: i32) -> (i32, i32) {
    %c0_i32 = arith.constant 0 : i32
    %c0_i32_0 = arith.constant 0 : i32
    %c0_i32_1 = arith.constant 0 : i32
    return %c0_i32, %c0_i32_0 : i32, i32
  }
  func.func @transform_4(%arg0: i32) -> (i32, i32) {
    %c0_i32 = arith.constant 0 : i32
    %c0_i32_0 = arith.constant 0 : i32
    %c0_i32_1 = arith.constant 0 : i32
    return %c0_i32, %c0_i32_0 : i32, i32
  }
  func.func @transform_5(%arg0: i32) -> (i32, i32) {
    %c0_i32 = arith.constant 0 : i32
    %c0_i32_0 = arith.constant 0 : i32
    %c0_i32_1 = arith.constant 0 : i32
    return %c0_i32, %c0_i32_0 : i32, i32
  }
  func.func @transform_6(%arg0: i32) -> (i32, i32) {
    %c0_i32 = arith.constant 0 : i32
    %c0_i32_0 = arith.constant 0 : i32
    %c0_i32_1 = arith.constant 0 : i32
    return %c0_i32, %c0_i32_0 : i32, i32
  }
  func.func @transform_7(%arg0: i32) -> (i32, i32) {
    %c0_i32 = arith.constant 0 : i32
    %c0_i32_0 = arith.constant 0 : i32
    return %arg0, %c0_i32 : i32, i32
  }
}

</mosaic_0001>

<bundles_post_ra>
// kernel: tpu_custom_call.1
= control target key start
LH: loop header
LB: loop body
LE: loop exit
PB: predicated region body
PF: predicated region fallthrough
CT: control target
= control target key end

     0   :  { %12 = vsyncpa [#allocation4], 0  ;;  %s865_s0 = inlined_call_operand.hbm [shape: bf16[8,128], index: 0, kind: input, shape index: {}]   ;;  %s866_s1 = inlined_call_operand.hbm [shape: bf16[128,128], index: 1, kind: input, shape index: {}]   ;;  %s867_s2 = inlined_call_operand.vmem [shape: f32[1,128], index: 2, kind: input, shape index: {}]   ;;  %s868_s3 = inlined_call_operand.hbm [shape: bf16[128,128], index: 3, kind: input, shape index: {}]   ;;  %s869_s4 = inlined_call_operand.vmem [shape: f32[1,128], index: 4, kind: input, shape index: {}]   ;;  %s870_s5 = inlined_call_operand.hbm [shape: bf16[128,128], index: 5, kind: input, shape index: {}]   ;;  %s871_s6 = inlined_call_operand.vmem [shape: f32[1,128], index: 6, kind: input, shape index: {}]   ;;  %s872_s7 = inlined_call_operand.hbm [shape: f32[8,128], index: 7, kind: output, shape index: {}]  }
   0x1   :  { %13 = vsyncpa [#allocation7], 0 }
   0x2   :  { %14 = vsyncpa [#allocation10], 0 }
   0x3   :  { %15 = vsyncpa [#allocation5], 0  ;;  %s708_s24 = smov [#allocation6]   ;;  %s590_s28 = scalar_lea.hbm %s866_s1, 1024 }
   0x4   :  { %s31_s25 = sshll.u32 %s708_s24, 4  ;;  %p591_p0 = scmp.ne.s32.totalorder %s866_s1, %s590_s28  ;;  %s32_s25 = int_to_ptr.vmem [resolvable:$true] %s31_s25 }
   0x5   :  { %p594_p1 = scmp.lt.u32.totalorder %s590_s28, %s866_s1 }
   0x7   :  { %p596_p2 = pnand %p594_p1, %p591_p0 }
   0x9   :  { %599 = shalt.err (!%p596_p2)
}
   0xa   :  { %s600_s10 = scalar_lea.vmem %s32_s25, 1024  ;;  %p605_p4 = scmp.lt.s32.totalorder %s32_s25, %s32_s25 }
   0xb   :  { %p601_p3 = scmp.ne.s32.totalorder %s32_s25, %s600_s10  ;;  %p606_p5 = scmp.lt.s32.totalorder %s600_s10, %s600_s10 }
   0xd   :  { %p607_p6 = por %p606_p5, %p605_p4 }
   0xf   :  { %p608_p7 = pnand %p607_p6, %p601_p3 }
  0x11   :  { %611 = shalt.err (!%p608_p7)
}
  0x12   :  { %s709_s11 = smov 64   ;;  %s710_s12 = smov 4  }
  0x13   :  { %37 = dma.hbm_to_vmem [thread:$0]  %s866_s1, 1024, %s32_s25, [#allocation7], %s709_s11, %s709_s11, %s710_s12  }
  0x14   :  { %s711_s15 = smov [#allocation3]   ;;  %s712_s17 = smov [#allocation8]  }
  0x15   :  { %s22_s16 = sshll.u32 %s711_s15, 4  ;;  %s45_s18 = sshll.u32 %s712_s17, 4  ;;  %s23_s16 = int_to_ptr.vmem [resolvable:$true] %s22_s16  ;;  %s46_s18 = int_to_ptr.vmem [resolvable:$true] %s45_s18 }
  0x16   :  { %s612_s21 = scalar_lea.hbm %s865_s0, 64 }
  0x17   :  { %p613_p8 = scmp.ne.s32.totalorder %s865_s0, %s612_s21  ;;  %p616_p9 = scmp.lt.u32.totalorder %s612_s21, %s865_s0 }
  0x19   :  { %p618_p10 = pnand %p616_p9, %p613_p8 }
  0x1b   :  { %621 = shalt.err (!%p618_p10)
}
  0x1c   :  { %s622_s1 = scalar_lea.vmem %s23_s16, 64  ;;  %p627_p12 = scmp.lt.s32.totalorder %s23_s16, %s23_s16 }
  0x1d   :  { %p623_p11 = scmp.ne.s32.totalorder %s23_s16, %s622_s1  ;;  %p628_p13 = scmp.lt.s32.totalorder %s622_s1, %s622_s1 }
  0x1f   :  { %p629_p0 = por %p628_p13, %p627_p12 }
  0x21   :  { %p630_p1 = pnand %p629_p0, %p623_p11 }
  0x23   :  { %633 = shalt.err (!%p630_p1)
}
  0x24   :  { %25 = dma.hbm_to_vmem [thread:$0]  %s865_s0, 64, %s23_s16, [#allocation4]  }
  0x25   :  { %s634_s30 = scalar_lea.hbm %s868_s3, 1024 }
  0x26   :  { %p635_p2 = scmp.ne.s32.totalorder %s868_s3, %s634_s30  ;;  %p638_p3 = scmp.lt.u32.totalorder %s634_s30, %s868_s3 }
  0x28   :  { %p640_p4 = pnand %p638_p3, %p635_p2 }
  0x2a   :  { %643 = shalt.err (!%p640_p4)
}
  0x2b   :  { %s644_s14 = scalar_lea.vmem %s46_s18, 1024  ;;  %p649_p6 = scmp.lt.s32.totalorder %s46_s18, %s46_s18 }
  0x2c   :  { %p645_p5 = scmp.ne.s32.totalorder %s46_s18, %s644_s14  ;;  %p650_p7 = scmp.lt.s32.totalorder %s644_s14, %s644_s14 }
  0x2e   :  { %p651_p8 = por %p650_p7, %p649_p6 }
  0x30   :  { %p652_p9 = pnand %p651_p8, %p645_p5 }
  0x32   :  { %655 = shalt.err (!%p652_p9)
}
  0x33   :  { %51 = dma.hbm_to_vmem [thread:$0]  %s868_s3, 1024, %s46_s18, [#allocation7], %s709_s11, %s709_s11, %s710_s12  }
  0x34   :  { %s713_s16 = smov [#allocation9]   ;;  %s656_s21 = scalar_lea.hbm %s870_s5, 1024 }
  0x35   :  { %s59_s17 = sshll.u32 %s713_s16, 4  ;;  %p657_p10 = scmp.ne.s32.totalorder %s870_s5, %s656_s21  ;;  %s60_s17 = int_to_ptr.vmem [resolvable:$true] %s59_s17 }
  0x36   :  { %p660_p11 = scmp.lt.u32.totalorder %s656_s21, %s870_s5 }
  0x38   :  { %p662_p12 = pnand %p660_p11, %p657_p10 }
  0x3a   :  { %665 = shalt.err (!%p662_p12)
}
  0x3b   :  { %s666_s1 = scalar_lea.vmem %s60_s17, 1024  ;;  %p671_p0 = scmp.lt.s32.totalorder %s60_s17, %s60_s17 }
  0x3c   :  { %p667_p13 = scmp.ne.s32.totalorder %s60_s17, %s666_s1  ;;  %p672_p1 = scmp.lt.s32.totalorder %s666_s1, %s666_s1 }
  0x3e   :  { %p673_p2 = por %p672_p1, %p671_p0 }
  0x40   :  { %p674_p3 = pnand %p673_p2, %p667_p13 }
  0x42   :  { %677 = shalt.err (!%p674_p3)
}
  0x43   :  { %65 = dma.hbm_to_vmem [thread:$0]  %s870_s5, 1024, %s60_s17, [#allocation10], %s709_s11, %s709_s11, %s710_s12  }
  0x44   :  { %700 = dma.done.wait [#allocation4], 64  }
  0x45   :  { %701 = vsyncadd [#allocation4], 4294967232 }
  0x46   :  { %702 = dma.done.wait [#allocation7], 2048  }
  0x47   :  { %703 = vsyncadd [#allocation7], 4294965248 }
  0x48   :  { %704 = dma.done.wait [#allocation10], 1024  }
  0x49   :  { %705 = vsyncadd [#allocation10], 4294966272  ;;  %v714_v0 = vmov 0.0   ;;  %vm715_vm0 = vmmov 0   ;;  %v566_v1 = vld [vmem:[#allocation6] sm:$0xff]   ;;  %v567_v2 = vld [vmem:[#allocation6 + $0x8] sm:$0xff]  }
  0x4a   :  { %497 = vmatprep.subr.bf16.mxu0 %v714_v0  ;;  %513 = vmatprep.mubr.msk.bf16.mxu0 %vm715_vm0, %v714_v0  ;;  %v568_v3 = vld [vmem:[#allocation6 + $0x10] sm:$0xff]   ;;  %v574_v4 = vld [vmem:[#allocation8] sm:$0xff]   ;;  %v569_v5 = vld [vmem:[#allocation6 + $0x18] sm:$0xff]   ;;  %s716_s28 = smov [#allocation11]  }
  0x4b   :  { %517 = vmatprep.subr.bf16.mxu1 %v714_v0  ;;  %533 = vmatprep.mubr.msk.bf16.mxu1 %vm715_vm0, %v714_v0  ;;  %v575_v6 = vld [vmem:[#allocation8 + $0x8] sm:$0xff]   ;;  %v570_v7 = vld [vmem:[#allocation6 + $0x20] sm:$0xff]   ;;  %v576_v8 = vld [vmem:[#allocation8 + $0x10] sm:$0xff]   ;;  %s432_s29 = sshll.u32 %s716_s28, 4  ;;  %s433_s29 = int_to_ptr.vmem [resolvable:$true] %s432_s29 }
  0x4c   :  { %498 = vmatpush3.bf16.msra.mxu0 %v566_v1  ;;  %518 = vmatpush3.bf16.msra.mxu1 %v574_v4  ;;  %v571_v9 = vld [vmem:[#allocation6 + $0x28] sm:$0xff]   ;;  %v577_v10 = vld [vmem:[#allocation8 + $0x18] sm:$0xff]   ;;  %v572_v11 = vld [vmem:[#allocation6 + $0x30] sm:$0xff]   ;;  %p683_p5 = scmp.lt.s32.totalorder %s433_s29, %s433_s29 }
  0x4d   :  { %499 = vmatprep.subr.bf16.mxu0 %v714_v0  ;;  %519 = vmatprep.subr.bf16.mxu1 %v714_v0  ;;  %v573_v12 = vld [vmem:[#allocation6 + $0x38] sm:$0xff]   ;;  %v578_v14 = vld [vmem:[#allocation8 + $0x20] sm:$0xff]   ;;  %v579_v15 = vld [vmem:[#allocation8 + $0x28] sm:$0xff]  }
  0x4e   :  { %v81_v13 = vld [vmem:[#allocation3] sm:$0xf]  ;;  %v580_v16 = vld [vmem:[#allocation8 + $0x30] sm:$0xff]   ;;  %v582_v18 = vld [vmem:[#allocation9] sm:$0xff]  }
  0x4f   :  { %v581_v17 = vld [vmem:[#allocation8 + $0x38] sm:$0xff]   ;;  %v583_v19 = vld [vmem:[#allocation9 + $0x8] sm:$0xff]   ;;  %v584_v20 = vld [vmem:[#allocation9 + $0x10] sm:$0xff]  }
  0x50   :  { %500 = vmatpush3.bf16.msra.mxu0 %v567_v2  ;;  %520 = vmatpush3.bf16.msra.mxu1 %v575_v6  ;;  %v585_v21 = vld [vmem:[#allocation9 + $0x18] sm:$0xff]   ;;  %v586_v32 = vld [vmem:[#allocation9 + $0x20] sm:$0xff]   ;;  %v587_v33 = vld [vmem:[#allocation9 + $0x28] sm:$0xff]  }
  0x51   :  { %501 = vmatprep.subr.bf16.mxu0 %v714_v0  ;;  %521 = vmatprep.subr.bf16.mxu1 %v714_v0  ;;  %v443_v22 = vld [vmem:[%s867_s2] ss:$0 sm:$0xff]  ;;  %v588_v34 = vld [vmem:[#allocation9 + $0x30] sm:$0xff]  }
  0x52   :  { %v589_v35 = vld [vmem:[#allocation9 + $0x38] sm:$0xff]  }
  0x53   :  { %v452_v36 = vld [vmem:[%s869_s4] ss:$0 sm:$0xff]  ;;  %s678_s4 = scalar_lea.vmem %s433_s29, 128 }
  0x54   :  { %502 = vmatpush3.bf16.msra.mxu0 %v568_v3  ;;  %522 = vmatpush3.bf16.msra.mxu1 %v576_v8  ;;  %v461_v46 = vld [vmem:[%s871_s6] ss:$0 sm:$0xff]  ;;  %p679_p4 = scmp.ne.s32.totalorder %s433_s29, %s678_s4  ;;  %p684_p6 = scmp.lt.s32.totalorder %s678_s4, %s678_s4 }
  0x55   :  { %503 = vmatprep.subr.bf16.mxu0 %v714_v0  ;;  %523 = vmatprep.subr.bf16.mxu1 %v714_v0 }
  0x56   :  { %p685_p7 = por %p684_p6, %p683_p5 }
  0x58   :  { %504 = vmatpush3.bf16.msra.mxu0 %v569_v5  ;;  %524 = vmatpush3.bf16.msra.mxu1 %v577_v10  ;;  %p686_p8 = pnand %p685_p7, %p679_p4 }
  0x59   :  { %505 = vmatprep.subr.bf16.mxu0 %v714_v0  ;;  %525 = vmatprep.subr.bf16.mxu1 %v714_v0 }
  0x5c   :  { %506 = vmatpush3.bf16.msra.mxu0 %v570_v7  ;;  %526 = vmatpush3.bf16.msra.mxu1 %v578_v14 }
  0x5d   :  { %507 = vmatprep.subr.bf16.mxu0 %v714_v0  ;;  %527 = vmatprep.subr.bf16.mxu1 %v714_v0 }
  0x60   :  { %508 = vmatpush3.bf16.msra.mxu0 %v571_v9  ;;  %528 = vmatpush3.bf16.msra.mxu1 %v579_v15 }
  0x61   :  { %509 = vmatprep.subr.bf16.mxu0 %v714_v0  ;;  %529 = vmatprep.subr.bf16.mxu1 %v714_v0 }
  0x64   :  { %510 = vmatpush3.bf16.msra.mxu0 %v572_v11  ;;  %530 = vmatpush3.bf16.msra.mxu1 %v580_v16 }
  0x65   :  { %511 = vmatprep.subr.bf16.mxu0 %v714_v0  ;;  %531 = vmatprep.subr.bf16.mxu1 %v714_v0 }
  0x68   :  { %512 = vmatpush3.bf16.msra.mxu0 %v573_v12  ;;  %532 = vmatpush3.bf16.msra.mxu1 %v581_v17 }
  0x69   :  { %537 = vmatprep.subr.bf16.mxu0 %v714_v0 }
  0x6b   :  { %514 = vmatmul.mubr.bf16.vlgmr.msra.gmra.mrb[0].mxu0 %v81_v13 }
  0x6c   :  { %553 = vmatprep.mubr.msk.bf16.mxu0 %vm715_vm0, %v714_v0  ;;  %538 = vmatpush3.bf16.msra.mxu0 %v582_v18 }
  0x6d   :  { %539 = vmatprep.subr.bf16.mxu0 %v714_v0 }
  0x70   :  { %540 = vmatpush3.bf16.msra.mxu0 %v583_v19 }
  0x71   :  { %541 = vmatprep.subr.bf16.mxu0 %v714_v0 }
  0x74   :  { %542 = vmatpush3.bf16.msra.mxu0 %v584_v20 }
  0x75   :  { %543 = vmatprep.subr.bf16.mxu0 %v714_v0 }
  0x78   :  { %544 = vmatpush3.bf16.msra.mxu0 %v585_v21 }
  0x79   :  { %545 = vmatprep.subr.bf16.mxu0 %v714_v0 }
  0x7c   :  { %546 = vmatpush3.bf16.msra.mxu0 %v586_v32 }
  0x7d   :  { %547 = vmatprep.subr.bf16.mxu0 %v714_v0 }
  0x80   :  { %548 = vmatpush3.bf16.msra.mxu0 %v587_v33 }
  0x81   :  { %549 = vmatprep.subr.bf16.mxu0 %v714_v0 }
  0x84   :  { %550 = vmatpush3.bf16.msra.mxu0 %v588_v34 }
  0x85   :  { %551 = vmatprep.subr.bf16.mxu0 %v714_v0 }
  0x88   :  { %552 = vmatpush3.bf16.msra.mxu0 %v589_v35 }
 0x13e   :  { %v187_v23 = vpop.f32.mrb[0].mxu0 }
 0x13f   :  { %v188_v24 = vadd.f32 %v443_v22, %v187_v23  ;;  %v515_v25 = vpop.f32.mrb[1].mxu0 }
 0x140   :  { %v190_v26 = vpop.f32.mrb[2].mxu0 }
 0x141   :  { %v193_v27 = vmul.f32 0.1, %v188_v24  ;;  %v516_v28 = vpop.f32.mrb[3].mxu0 }
 0x143   :  { %v194_v29 = vmax.f32 %v188_v24, %v193_v27 }
 0x145   :  { %v195_v30 = vpack.c.bf16 %v194_v29, %v194_v29 }
 0x147   :  { %196 = vst [vmem:[#allocation2] sm:$0xf] %v195_v30 }
 0x14e   :  { %v197_v31 = vld [vmem:[#allocation2] sm:$0xf] }
 0x14f   :  { %534 = vmatmul.mubr.bf16.vlgmr.msra.gmra.mrb[0].mxu1 %v197_v31 }
 0x222   :  { %v303_v37 = vpop.f32.mrb[0].mxu1 }
 0x223   :  { %v304_v38 = vadd.f32 %v452_v36, %v303_v37  ;;  %v535_v39 = vpop.f32.mrb[1].mxu1 }
 0x224   :  { %v306_v40 = vpop.f32.mrb[2].mxu1 }
 0x225   :  { %v309_v41 = vmul.f32 0.1, %v304_v38  ;;  %v536_v42 = vpop.f32.mrb[3].mxu1 }
 0x227   :  { %v310_v43 = vmax.f32 %v304_v38, %v309_v41 }
 0x229   :  { %v311_v44 = vpack.c.bf16 %v310_v43, %v310_v43 }
 0x22b   :  { %312 = vst [vmem:[#allocation2] sm:$0xf] %v311_v44 }
 0x232   :  { %v313_v45 = vld [vmem:[#allocation2] sm:$0xf] }
 0x233   :  { %554 = vmatmul.mubr.bf16.vlgmr.msra.gmra.mrb[4].mxu0 %v313_v45 }
 0x306   :  { %v419_v47 = vpop.f32.mrb[4].mxu0 }
 0x307   :  { %v420_v48 = vadd.f32 %v461_v46, %v419_v47  ;;  %v555_v49 = vpop.f32.mrb[5].mxu0 }
 0x308   :  { %v422_v50 = vpop.f32.mrb[6].mxu0 }
 0x309   :  { %425 = vst [vmem:[#allocation11] sm:$0xff] %v420_v48  ;;  %v556_v51 = vpop.f32.mrb[7].mxu0 }
 0x30a   :  { %689 = shalt.err (!%p686_p8)
}
 0x30b   :  { %s690_s6 = scalar_lea.hbm %s872_s7, 128 }
 0x30c   :  { %p691_p9 = scmp.ne.s32.totalorder %s872_s7, %s690_s6  ;;  %p694_p10 = scmp.lt.u32.totalorder %s690_s6, %s872_s7 }
 0x30e   :  { %p696_p11 = pnand %p694_p10, %p691_p9 }
 0x310   :  { %699 = shalt.err (!%p696_p11)
}
 0x311   :  { %435 = dma.vmem_to_hbm [thread:$0]  %s433_s29, 128, %s872_s7, [#allocation5]  }
 0x312   :  { %706 = dma.done.wait [#allocation5], 128  }
 0x313   :  { %707 = vsyncadd [#allocation5], 4294967168 }
 0x314   :  { %439 = vsyncpa [#allocation4], 1 }
 0x315   :  { %440 = vsyncpa [#allocation7], 1 }
 0x316   :  { %441 = vsyncpa [#allocation10], 1 }
 0x317   :  { %442 = vsyncpa [#allocation5], 1 }

// kernel: tpu_custom_call.1
= control target key start
LH: loop header
LB: loop body
LE: loop exit
PB: predicated region body
PF: predicated region fallthrough
CT: control target
= control target key end

     0   :  { %12 = vsyncpa [#allocation4], 0  ;;  %s865_s0 = inlined_call_operand.hbm [shape: bf16[8,128], index: 0, kind: input, shape index: {}]   ;;  %s866_s1 = inlined_call_operand.hbm [shape: bf16[128,128], index: 1, kind: input, shape index: {}]   ;;  %s867_s2 = inlined_call_operand.vmem [shape: f32[1,128], index: 2, kind: input, shape index: {}]   ;;  %s868_s3 = inlined_call_operand.hbm [shape: bf16[128,128], index: 3, kind: input, shape index: {}]   ;;  %s869_s4 = inlined_call_operand.vmem [shape: f32[1,128], index: 4, kind: input, shape index: {}]   ;;  %s870_s5 = inlined_call_operand.hbm [shape: bf16[128,128], index: 5, kind: input, shape index: {}]   ;;  %s871_s6 = inlined_call_operand.vmem [shape: f32[1,128], index: 6, kind: input, shape index: {}]   ;;  %s872_s7 = inlined_call_operand.hbm [shape: f32[8,128], index: 7, kind: output, shape index: {}]  }
   0x1   :  { %13 = vsyncpa [#allocation7], 0 }
   0x2   :  { %14 = vsyncpa [#allocation10], 0 }
   0x3   :  { %15 = vsyncpa [#allocation5], 0  ;;  %s708_s24 = smov [#allocation6]   ;;  %s590_s28 = scalar_lea.hbm %s866_s1, 1024 }
   0x4   :  { %s31_s25 = sshll.u32 %s708_s24, 4  ;;  %p591_p0 = scmp.ne.s32.totalorder %s866_s1, %s590_s28  ;;  %s32_s25 = int_to_ptr.vmem [resolvable:$true] %s31_s25 }
   0x5   :  { %p594_p1 = scmp.lt.u32.totalorder %s590_s28, %s866_s1 }
   0x7   :  { %p596_p2 = pnand %p594_p1, %p591_p0 }
   0x9   :  { %599 = shalt.err (!%p596_p2)
}
   0xa   :  { %s600_s10 = scalar_lea.vmem %s32_s25, 1024  ;;  %p605_p4 = scmp.lt.s32.totalorder %s32_s25, %s32_s25 }
   0xb   :  { %p601_p3 = scmp.ne.s32.totalorder %s32_s25, %s600_s10  ;;  %p606_p5 = scmp.lt.s32.totalorder %s600_s10, %s600_s10 }
   0xd   :  { %p607_p6 = por %p606_p5, %p605_p4 }
   0xf   :  { %p608_p7 = pnand %p607_p6, %p601_p3 }
  0x11   :  { %611 = shalt.err (!%p608_p7)
}
  0x12   :  { %s709_s11 = smov 64   ;;  %s710_s12 = smov 4  }
  0x13   :  { %37 = dma.hbm_to_vmem [thread:$0]  %s866_s1, 1024, %s32_s25, [#allocation7], %s709_s11, %s709_s11, %s710_s12  }
  0x14   :  { %s711_s15 = smov [#allocation3]   ;;  %s712_s17 = smov [#allocation8]  }
  0x15   :  { %s22_s16 = sshll.u32 %s711_s15, 4  ;;  %s45_s18 = sshll.u32 %s712_s17, 4  ;;  %s23_s16 = int_to_ptr.vmem [resolvable:$true] %s22_s16  ;;  %s46_s18 = int_to_ptr.vmem [resolvable:$true] %s45_s18 }
  0x16   :  { %s612_s21 = scalar_lea.hbm %s865_s0, 64 }
  0x17   :  { %p613_p8 = scmp.ne.s32.totalorder %s865_s0, %s612_s21  ;;  %p616_p9 = scmp.lt.u32.totalorder %s612_s21, %s865_s0 }
  0x19   :  { %p618_p10 = pnand %p616_p9, %p613_p8 }
  0x1b   :  { %621 = shalt.err (!%p618_p10)
}
  0x1c   :  { %s622_s1 = scalar_lea.vmem %s23_s16, 64  ;;  %p627_p12 = scmp.lt.s32.totalorder %s23_s16, %s23_s16 }
  0x1d   :  { %p623_p11 = scmp.ne.s32.totalorder %s23_s16, %s622_s1  ;;  %p628_p13 = scmp.lt.s32.totalorder %s622_s1, %s622_s1 }
  0x1f   :  { %p629_p0 = por %p628_p13, %p627_p12 }
  0x21   :  { %p630_p1 = pnand %p629_p0, %p623_p11 }
  0x23   :  { %633 = shalt.err (!%p630_p1)
}
  0x24   :  { %25 = dma.hbm_to_vmem [thread:$0]  %s865_s0, 64, %s23_s16, [#allocation4]  }
  0x25   :  { %s634_s30 = scalar_lea.hbm %s868_s3, 1024 }
  0x26   :  { %p635_p2 = scmp.ne.s32.totalorder %s868_s3, %s634_s30  ;;  %p638_p3 = scmp.lt.u32.totalorder %s634_s30, %s868_s3 }
  0x28   :  { %p640_p4 = pnand %p638_p3, %p635_p2 }
  0x2a   :  { %643 = shalt.err (!%p640_p4)
}
  0x2b   :  { %s644_s14 = scalar_lea.vmem %s46_s18, 1024  ;;  %p649_p6 = scmp.lt.s32.totalorder %s46_s18, %s46_s18 }
  0x2c   :  { %p645_p5 = scmp.ne.s32.totalorder %s46_s18, %s644_s14  ;;  %p650_p7 = scmp.lt.s32.totalorder %s644_s14, %s644_s14 }
  0x2e   :  { %p651_p8 = por %p650_p7, %p649_p6 }
  0x30   :  { %p652_p9 = pnand %p651_p8, %p645_p5 }
  0x32   :  { %655 = shalt.err (!%p652_p9)
}
  0x33   :  { %51 = dma.hbm_to_vmem [thread:$0]  %s868_s3, 1024, %s46_s18, [#allocation7], %s709_s11, %s709_s11, %s710_s12  }
  0x34   :  { %s713_s16 = smov [#allocation9]   ;;  %s656_s21 = scalar_lea.hbm %s870_s5, 1024 }
  0x35   :  { %s59_s17 = sshll.u32 %s713_s16, 4  ;;  %p657_p10 = scmp.ne.s32.totalorder %s870_s5, %s656_s21  ;;  %s60_s17 = int_to_ptr.vmem [resolvable:$true] %s59_s17 }
  0x36   :  { %p660_p11 = scmp.lt.u32.totalorder %s656_s21, %s870_s5 }
  0x38   :  { %p662_p12 = pnand %p660_p11, %p657_p10 }
  0x3a   :  { %665 = shalt.err (!%p662_p12)
}
  0x3b   :  { %s666_s1 = scalar_lea.vmem %s60_s17, 1024  ;;  %p671_p0 = scmp.lt.s32.totalorder %s60_s17, %s60_s17 }
  0x3c   :  { %p667_p13 = scmp.ne.s32.totalorder %s60_s17, %s666_s1  ;;  %p672_p1 = scmp.lt.s32.totalorder %s666_s1, %s666_s1 }
  0x3e   :  { %p673_p2 = por %p672_p1, %p671_p0 }
  0x40   :  { %p674_p3 = pnand %p673_p2, %p667_p13 }
  0x42   :  { %677 = shalt.err (!%p674_p3)
}
  0x43   :  { %65 = dma.hbm_to_vmem [thread:$0]  %s870_s5, 1024, %s60_s17, [#allocation10], %s709_s11, %s709_s11, %s710_s12  }
  0x44   :  { %700 = dma.done.wait [#allocation4], 64  }
  0x45   :  { %701 = vsyncadd [#allocation4], 4294967232 }
  0x46   :  { %702 = dma.done.wait [#allocation7], 2048  }
  0x47   :  { %703 = vsyncadd [#allocation7], 4294965248 }
  0x48   :  { %704 = dma.done.wait [#allocation10], 1024  }
  0x49   :  { %705 = vsyncadd [#allocation10], 4294966272  ;;  %v714_v0 = vmov 0.0   ;;  %vm715_vm0 = vmmov 0   ;;  %v566_v1 = vld [vmem:[#allocation6] sm:$0xff]   ;;  %v567_v2 = vld [vmem:[#allocation6 + $0x8] sm:$0xff]  }
  0x4a   :  { %497 = vmatprep.subr.bf16.mxu0 %v714_v0  ;;  %513 = vmatprep.mubr.msk.bf16.mxu0 %vm715_vm0, %v714_v0  ;;  %v568_v3 = vld [vmem:[#allocation6 + $0x10] sm:$0xff]   ;;  %v574_v4 = vld [vmem:[#allocation8] sm:$0xff]   ;;  %v569_v5 = vld [vmem:[#allocation6 + $0x18] sm:$0xff]   ;;  %s716_s28 = smov [#allocation11]  }
  0x4b   :  { %517 = vmatprep.subr.bf16.mxu1 %v714_v0  ;;  %533 = vmatprep.mubr.msk.bf16.mxu1 %vm715_vm0, %v714_v0  ;;  %v575_v6 = vld [vmem:[#allocation8 + $0x8] sm:$0xff]   ;;  %v570_v7 = vld [vmem:[#allocation6 + $0x20] sm:$0xff]   ;;  %v576_v8 = vld [vmem:[#allocation8 + $0x10] sm:$0xff]   ;;  %s432_s29 = sshll.u32 %s716_s28, 4  ;;  %s433_s29 = int_to_ptr.vmem [resolvable:$true] %s432_s29 }
  0x4c   :  { %498 = vmatpush3.bf16.msra.mxu0 %v566_v1  ;;  %518 = vmatpush3.bf16.msra.mxu1 %v574_v4  ;;  %v571_v9 = vld [vmem:[#allocation6 + $0x28] sm:$0xff]   ;;  %v577_v10 = vld [vmem:[#allocation8 + $0x18] sm:$0xff]   ;;  %v572_v11 = vld [vmem:[#allocation6 + $0x30] sm:$0xff]   ;;  %p683_p5 = scmp.lt.s32.totalorder %s433_s29, %s433_s29 }
  0x4d   :  { %499 = vmatprep.subr.bf16.mxu0 %v714_v0  ;;  %519 = vmatprep.subr.bf16.mxu1 %v714_v0  ;;  %v573_v12 = vld [vmem:[#allocation6 + $0x38] sm:$0xff]   ;;  %v578_v14 = vld [vmem:[#allocation8 + $0x20] sm:$0xff]   ;;  %v579_v15 = vld [vmem:[#allocation8 + $0x28] sm:$0xff]  }
  0x4e   :  { %v81_v13 = vld [vmem:[#allocation3] sm:$0xf]  ;;  %v580_v16 = vld [vmem:[#allocation8 + $0x30] sm:$0xff]   ;;  %v582_v18 = vld [vmem:[#allocation9] sm:$0xff]  }
  0x4f   :  { %v581_v17 = vld [vmem:[#allocation8 + $0x38] sm:$0xff]   ;;  %v583_v19 = vld [vmem:[#allocation9 + $0x8] sm:$0xff]   ;;  %v584_v20 = vld [vmem:[#allocation9 + $0x10] sm:$0xff]  }
  0x50   :  { %500 = vmatpush3.bf16.msra.mxu0 %v567_v2  ;;  %520 = vmatpush3.bf16.msra.mxu1 %v575_v6  ;;  %v585_v21 = vld [vmem:[#allocation9 + $0x18] sm:$0xff]   ;;  %v586_v32 = vld [vmem:[#allocation9 + $0x20] sm:$0xff]   ;;  %v587_v33 = vld [vmem:[#allocation9 + $0x28] sm:$0xff]  }
  0x51   :  { %501 = vmatprep.subr.bf16.mxu0 %v714_v0  ;;  %521 = vmatprep.subr.bf16.mxu1 %v714_v0  ;;  %v443_v22 = vld [vmem:[%s867_s2] ss:$0 sm:$0xff]  ;;  %v588_v34 = vld [vmem:[#allocation9 + $0x30] sm:$0xff]  }
  0x52   :  { %v589_v35 = vld [vmem:[#allocation9 + $0x38] sm:$0xff]  }
  0x53   :  { %v452_v36 = vld [vmem:[%s869_s4] ss:$0 sm:$0xff]  ;;  %s678_s4 = scalar_lea.vmem %s433_s29, 128 }
  0x54   :  { %502 = vmatpush3.bf16.msra.mxu0 %v568_v3  ;;  %522 = vmatpush3.bf16.msra.mxu1 %v576_v8  ;;  %v461_v46 = vld [vmem:[%s871_s6] ss:$0 sm:$0xff]  ;;  %p679_p4 = scmp.ne.s32.totalorder %s433_s29, %s678_s4  ;;  %p684_p6 = scmp.lt.s32.totalorder %s678_s4, %s678_s4 }
  0x55   :  { %503 = vmatprep.subr.bf16.mxu0 %v714_v0  ;;  %523 = vmatprep.subr.bf16.mxu1 %v714_v0 }
  0x56   :  { %p685_p7 = por %p684_p6, %p683_p5 }
  0x58   :  { %504 = vmatpush3.bf16.msra.mxu0 %v569_v5  ;;  %524 = vmatpush3.bf16.msra.mxu1 %v577_v10  ;;  %p686_p8 = pnand %p685_p7, %p679_p4 }
  0x59   :  { %505 = vmatprep.subr.bf16.mxu0 %v714_v0  ;;  %525 = vmatprep.subr.bf16.mxu1 %v714_v0 }
  0x5c   :  { %506 = vmatpush3.bf16.msra.mxu0 %v570_v7  ;;  %526 = vmatpush3.bf16.msra.mxu1 %v578_v14 }
  0x5d   :  { %507 = vmatprep.subr.bf16.mxu0 %v714_v0  ;;  %527 = vmatprep.subr.bf16.mxu1 %v714_v0 }
  0x60   :  { %508 = vmatpush3.bf16.msra.mxu0 %v571_v9  ;;  %528 = vmatpush3.bf16.msra.mxu1 %v579_v15 }
  0x61   :  { %509 = vmatprep.subr.bf16.mxu0 %v714_v0  ;;  %529 = vmatprep.subr.bf16.mxu1 %v714_v0 }
  0x64   :  { %510 = vmatpush3.bf16.msra.mxu0 %v572_v11  ;;  %530 = vmatpush3.bf16.msra.mxu1 %v580_v16 }
  0x65   :  { %511 = vmatprep.subr.bf16.mxu0 %v714_v0  ;;  %531 = vmatprep.subr.bf16.mxu1 %v714_v0 }
  0x68   :  { %512 = vmatpush3.bf16.msra.mxu0 %v573_v12  ;;  %532 = vmatpush3.bf16.msra.mxu1 %v581_v17 }
  0x69   :  { %537 = vmatprep.subr.bf16.mxu0 %v714_v0 }
  0x6b   :  { %514 = vmatmul.mubr.bf16.vlgmr.msra.gmra.mrb[0].mxu0 %v81_v13 }
  0x6c   :  { %553 = vmatprep.mubr.msk.bf16.mxu0 %vm715_vm0, %v714_v0  ;;  %538 = vmatpush3.bf16.msra.mxu0 %v582_v18 }
  0x6d   :  { %539 = vmatprep.subr.bf16.mxu0 %v714_v0 }
  0x70   :  { %540 = vmatpush3.bf16.msra.mxu0 %v583_v19 }
  0x71   :  { %541 = vmatprep.subr.bf16.mxu0 %v714_v0 }
  0x74   :  { %542 = vmatpush3.bf16.msra.mxu0 %v584_v20 }
  0x75   :  { %543 = vmatprep.subr.bf16.mxu0 %v714_v0 }
  0x78   :  { %544 = vmatpush3.bf16.msra.mxu0 %v585_v21 }
  0x79   :  { %545 = vmatprep.subr.bf16.mxu0 %v714_v0 }
  0x7c   :  { %546 = vmatpush3.bf16.msra.mxu0 %v586_v32 }
  0x7d   :  { %547 = vmatprep.subr.bf16.mxu0 %v714_v0 }
  0x80   :  { %548 = vmatpush3.bf16.msra.mxu0 %v587_v33 }
  0x81   :  { %549 = vmatprep.subr.bf16.mxu0 %v714_v0 }
  0x84   :  { %550 = vmatpush3.bf16.msra.mxu0 %v588_v34 }
  0x85   :  { %551 = vmatprep.subr.bf16.mxu0 %v714_v0 }
  0x88   :  { %552 = vmatpush3.bf16.msra.mxu0 %v589_v35 }
 0x13e   :  { %v187_v23 = vpop.f32.mrb[0].mxu0 }
 0x13f   :  { %v188_v24 = vadd.f32 %v443_v22, %v187_v23  ;;  %v515_v25 = vpop.f32.mrb[1].mxu0 }
 0x140   :  { %v190_v26 = vpop.f32.mrb[2].mxu0 }
 0x141   :  { %v193_v27 = vmul.f32 0.1, %v188_v24  ;;  %v516_v28 = vpop.f32.mrb[3].mxu0 }
 0x143   :  { %v194_v29 = vmax.f32 %v188_v24, %v193_v27 }
 0x145   :  { %v195_v30 = vpack.c.bf16 %v194_v29, %v194_v29 }
 0x147   :  { %196 = vst [vmem:[#allocation2] sm:$0xf] %v195_v30 }
 0x14e   :  { %v197_v31 = vld [vmem:[#allocation2] sm:$0xf] }
 0x14f   :  { %534 = vmatmul.mubr.bf16.vlgmr.msra.gmra.mrb[0].mxu1 %v197_v31 }
 0x222   :  { %v303_v37 = vpop.f32.mrb[0].mxu1 }
 0x223   :  { %v304_v38 = vadd.f32 %v452_v36, %v303_v37  ;;  %v535_v39 = vpop.f32.mrb[1].mxu1 }
 0x224   :  { %v306_v40 = vpop.f32.mrb[2].mxu1 }
 0x225   :  { %v309_v41 = vmul.f32 0.1, %v304_v38  ;;  %v536_v42 = vpop.f32.mrb[3].mxu1 }
 0x227   :  { %v310_v43 = vmax.f32 %v304_v38, %v309_v41 }
 0x229   :  { %v311_v44 = vpack.c.bf16 %v310_v43, %v310_v43 }
 0x22b   :  { %312 = vst [vmem:[#allocation2] sm:$0xf] %v311_v44 }
 0x232   :  { %v313_v45 = vld [vmem:[#allocation2] sm:$0xf] }
 0x233   :  { %554 = vmatmul.mubr.bf16.vlgmr.msra.gmra.mrb[4].mxu0 %v313_v45 }
 0x306   :  { %v419_v47 = vpop.f32.mrb[4].mxu0 }
 0x307   :  { %v420_v48 = vadd.f32 %v461_v46, %v419_v47  ;;  %v555_v49 = vpop.f32.mrb[5].mxu0 }
 0x308   :  { %v422_v50 = vpop.f32.mrb[6].mxu0 }
 0x309   :  { %425 = vst [vmem:[#allocation11] sm:$0xff] %v420_v48  ;;  %v556_v51 = vpop.f32.mrb[7].mxu0 }
 0x30a   :  { %689 = shalt.err (!%p686_p8)
}
 0x30b   :  { %s690_s6 = scalar_lea.hbm %s872_s7, 128 }
 0x30c   :  { %p691_p9 = scmp.ne.s32.totalorder %s872_s7, %s690_s6  ;;  %p694_p10 = scmp.lt.u32.totalorder %s690_s6, %s872_s7 }
 0x30e   :  { %p696_p11 = pnand %p694_p10, %p691_p9 }
 0x310   :  { %699 = shalt.err (!%p696_p11)
}
 0x311   :  { %435 = dma.vmem_to_hbm [thread:$0]  %s433_s29, 128, %s872_s7, [#allocation5]  }
 0x312   :  { %706 = dma.done.wait [#allocation5], 128  }
 0x313   :  { %707 = vsyncadd [#allocation5], 4294967168 }
 0x314   :  { %439 = vsyncpa [#allocation4], 1 }
 0x315   :  { %440 = vsyncpa [#allocation7], 1 }
 0x316   :  { %441 = vsyncpa [#allocation10], 1 }
 0x317   :  { %442 = vsyncpa [#allocation5], 1 }

</bundles_post_ra>
